<compile_context>
chip_gen: v7x
topology: tpu7x:2x2x1
jax: 0.10.0
libtpu: 0.0.40
codegen_flags: <defaults>
</compile_context>

<pallas_src>
import math
from functools import partial

import jax
import jax.numpy as jnp
from jax.experimental import pallas as pl
from jax.experimental.pallas import tpu as pltpu

_MIB = 1024 * 1024


def _get_pad(size: int, multiple: int):
    new_size = math.ceil(size / multiple) * multiple
    pad_size = new_size - size
    pad_left = pad_size // 2
    pad_right = pad_size - pad_left
    return pad_left, pad_right


def _round_up(x: int, m: int) -> int:
    return -(-x // m) * m


def _vmem_capacity_bytes() -> int:
    """Per-TensorCore VMEM capacity, with a conservative fallback."""
    try:
        cap = int(pltpu.get_tpu_info().vmem_capacity_bytes)
        if cap > 0:
            return cap
    except Exception:
        pass
    return 64 * _MIB  # v7x per-TC VMEM; v5e/v6e have 128 MiB (still safe).


def _padded_slab_bytes(h: int, w: int, itemsize: int) -> int:
    """VMEM bytes for one (h, w) slice after (sublane, 128)-lane tiling."""
    sublane = max(8, 32 // itemsize)  # 8 for f32, 16 for bf16, 32 for int8
    return _round_up(h, sublane) * _round_up(w, 128) * itemsize


def _choose_tb(nc: int, per_nc_bytes: int, tile_budget_bytes: int) -> int:
    """Largest TB that (a) fits the double-buffered VMEM budget, (b) divides
    NC exactly, (c) leaves >= 2 grid steps (prefer an even count) so v7x's two
    TensorCores both get balanced work."""
    cap = max(1, tile_budget_bytes // max(per_nc_bytes, 1))
    if nc >= 2:
        cap = min(cap, nc // 2)  # guarantee at least 2 grid steps
    cap = max(1, min(cap, nc))
    best_any = None
    for tb in range(cap, 0, -1):
        if nc % tb:
            continue
        if best_any is None:
            best_any = tb
        if (nc // tb) % 2 == 0:  # even step count -> balanced megacore split
            return tb
    return best_any if best_any is not None else 1


def _center_pad_kernel(x_ref, o_ref, *, pad_top, pad_bottom, pad_left,
                       pad_right, H, W):
    dtype = o_ref.dtype
    tb, H_new, W_new = o_ref.shape

    if W_new <= 128:
        # Narrow-row regime: every row store is a masked sub-vreg store and
        # the vector-store slot is the binding resource.  One bulk zero-fill
        # plus one (lane-shifted) interior store -> ~2 store ops per row,
        # instead of 3 masked stores per interior row (left/interior/right).
        o_ref[...] = jnp.zeros((tb, H_new, W_new), dtype)
        o_ref[:, pad_top:pad_top + H, pad_left:pad_left + W] = x_ref[...]
    else:
        # Wide-row regime: stores are mostly dense vregs and HBM bandwidth
        # binds.  Zero only the border strips so the wide interior is written
        # exactly once (no zero-fill + overwrite double-write).
        if pad_top:
            o_ref[:, :pad_top, :] = jnp.zeros((tb, pad_top, W_new), dtype)
        if pad_bottom:
            o_ref[:, pad_top + H:, :] = jnp.zeros((tb, pad_bottom, W_new),
                                                  dtype)
        if pad_left:
            o_ref[:, pad_top:pad_top + H, :pad_left] = jnp.zeros(
                (tb, H, pad_left), dtype)
        if pad_right:
            o_ref[:, pad_top:pad_top + H, pad_left + W:] = jnp.zeros(
                (tb, H, pad_right), dtype)
        o_ref[:, pad_top:pad_top + H, pad_left:pad_left + W] = x_ref[...]


def center_padding(x: jax.Array, multiple: int) -> jax.Array:
    """Pallas implementation of CenterPadding.forward for 4-D NCHW inputs."""
    assert x.ndim == 4, "expected NCHW input"
    N, C, H, W = x.shape
    pad_w_left, pad_w_right = _get_pad(W, multiple)
    pad_h_top, pad_h_bottom = _get_pad(H, multiple)
    H_new = H + pad_h_top + pad_h_bottom
    W_new = W + pad_w_left + pad_w_right

    if H_new == H and W_new == W:
        return x  # nothing to pad

    NC = N * C
    x_flat = x.reshape(NC, H, W)
    itemsize = jnp.dtype(x.dtype).itemsize

    # Padded-layout VMEM cost per NC row, double-buffered (2 bufs per spec).
    in_slab = _padded_slab_bytes(H, W, itemsize)
    out_slab = _padded_slab_bytes(H_new, W_new, itemsize)
    per_nc = 2 * (in_slab + out_slab)

    vmem_cap = _vmem_capacity_bytes()
    tile_budget = vmem_cap // 2  # ~32 MiB on v7x, ~64 MiB on v5e/v6e
    TB = _choose_tb(NC, per_nc, tile_budget)
    grid = (NC // TB,)

    usage = TB * per_nc
    vmem_limit = int(min(max(usage + 16 * _MIB, 32 * _MIB), vmem_cap))

    kernel = partial(
        _center_pad_kernel,
        pad_top=pad_h_top,
        pad_bottom=pad_h_bottom,
        pad_left=pad_w_left,
        pad_right=pad_w_right,
        H=H,
        W=W,
    )

    out_flat = pl.pallas_call(
        kernel,
        grid=grid,
        in_specs=[pl.BlockSpec((TB, H, W), lambda i: (i, 0, 0))],
        out_specs=pl.BlockSpec((TB, H_new, W_new), lambda i: (i, 0, 0)),
        out_shape=jax.ShapeDtypeStruct((NC, H_new, W_new), x.dtype),
        compiler_params=pltpu.CompilerParams(
            # "parallel" shards the NC axis across TensorCores on megacore
            # parts (v7x); no-op on single-TC v5e/v6e.
            dimension_semantics=("parallel",),
            vmem_limit_bytes=vmem_limit,
        ),
        cost_estimate=pl.CostEstimate(
            flops=0,
            transcendentals=0,
            bytes_accessed=NC * (H * W + H_new * W_new) * itemsize,
        ),
    )(x_flat)

    return out_flat.reshape(N, C, H_new, W_new)


if __name__ == "__main__":
    key = jax.random.PRNGKey(0)

    # Test 1: narrow-row regime (W_new <= 128).
    N, C, H, W = 2, 4, 16, 16
    multiple = 7  # H=W=16 -> padded to 21 (pad_left=2, pad_right=3)
    x = jax.random.normal(key, (N, C, H, W), dtype=jnp.float32)
    out = jax.block_until_ready(center_padding(x, multiple))
    ref = jnp.pad(x, ((0, 0), (0, 0), _get_pad(H, multiple),
                      _get_pad(W, multiple)))
    assert out.shape == ref.shape, (out.shape, ref.shape)
    assert out.dtype == x.dtype
    assert jnp.array_equal(out, ref)

    # Test 2: wide-row regime (W_new > 128, border-strip path).
    N2, C2, H2, W2 = 1, 2, 8, 130
    multiple2 = 16  # H: 8 -> 16, W: 130 -> 144
    x2 = jax.random.normal(jax.random.PRNGKey(0), (N2, C2, H2, W2),
                           dtype=jnp.float32)
    out2 = jax.block_until_ready(center_padding(x2, multiple2))
    ref2 = jnp.pad(x2, ((0, 0), (0, 0), _get_pad(H2, multiple2),
                        _get_pad(W2, multiple2)))
    assert out2.shape == ref2.shape, (out2.shape, ref2.shape)
    assert out2.dtype == x2.dtype
    assert jnp.array_equal(out2, ref2)

    print("KERNEL_OK")
</pallas_src>

<mosaic_0001>
module attributes {stable_mosaic.version = 11 : i64} {
  func.func @_center_pad_kernel(%arg0: i32, %arg1: memref<4x16x16xf32, #tpu.memory_space<vmem>>, %arg2: memref<4x21x21xf32, #tpu.memory_space<vmem>>) attributes {dimension_semantics = [#tpu.dimension_semantics<parallel>], iteration_bounds = array<i64: 2>, scalar_prefetch = 0 : i64, scratch_operands = 0 : i64, tpu.core_type = #tpu.core_type<tc>, window_params = [{transform_indices = @transform_0, window_bounds = array<i64: 4, 16, 16>}, {transform_indices = @transform_1, window_bounds = array<i64: 4, 21, 21>}]} {
    %cst = arith.constant 0.000000e+00 : f32
    %0 = vector.broadcast %cst : f32 to vector<4x21x21xf32>
    %c0 = arith.constant 0 : index
    %c0_0 = arith.constant 0 : index
    %c0_1 = arith.constant 0 : index
    %1 = vector.load %arg2[%c0, %c0_0, %c0_1] : memref<4x21x21xf32, #tpu.memory_space<vmem>>, vector<4x21x21xf32>
    tpu.vector_store %arg2[%c0, %c0_0, %c0_1], %0 {strides = array<i32>} : memref<4x21x21xf32, #tpu.memory_space<vmem>>, vector<4x21x21xf32>,
    %c0_2 = arith.constant 0 : index
    %c0_3 = arith.constant 0 : index
    %c0_4 = arith.constant 0 : index
    %2 = vector.load %arg1[%c0_2, %c0_3, %c0_4] : memref<4x16x16xf32, #tpu.memory_space<vmem>>, vector<4x16x16xf32>
    %c0_5 = arith.constant 0 : index
    %c2 = arith.constant 2 : index
    %c2_6 = arith.constant 2 : index
    %3 = vector.load %arg2[%c0_5, %c2, %c2_6] : memref<4x21x21xf32, #tpu.memory_space<vmem>>, vector<4x16x16xf32>
    tpu.vector_store %arg2[%c0_5, %c2, %c2_6], %2 {strides = array<i32>} : memref<4x21x21xf32, #tpu.memory_space<vmem>>, vector<4x16x16xf32>,
    return
  }
  func.func @transform_0(%arg0: i32) -> (i32, i32, i32) {
    %c0_i32 = arith.constant 0 : i32
    %c0_i32_0 = arith.constant 0 : i32
    %c0_i32_1 = arith.constant 0 : i32
    return %arg0, %c0_i32, %c0_i32_0 : i32, i32, i32
  }
  func.func @transform_1(%arg0: i32) -> (i32, i32, i32) {
    %c0_i32 = arith.constant 0 : i32
    %c0_i32_0 = arith.constant 0 : i32
    %c0_i32_1 = arith.constant 0 : i32
    return %arg0, %c0_i32, %c0_i32_0 : i32, i32, i32
  }
}

</mosaic_0001>

<bundles_post_ra>
// kernel: tpu_custom_call.1
= control target key start
LH: loop header
LB: loop body
LE: loop exit
PB: predicated region body
PF: predicated region fallthrough
CT: control target
= control target key end

     0   :  { %6 = vsyncpa [#allocation3], 0  ;;  %s574_s0 = inlined_call_operand.hbm [shape: f32[8,16,16], index: 0, kind: input, shape index: {}]   ;;  %s575_s1 = inlined_call_operand.vmem [shape: f32[8,21,21], index: 1, kind: output, shape index: {}]  }
   0x1   :  { %8 = vsyncpa [#allocation3 + $0x1], 0  ;;  %s415_s6 = smov 0   ;;  %s417_s7 = smov 0  }
   0x2   :  { %s419_s8 = smov 0   ;;  %s421_s9 = smov 0  }
   0x3 LB: > { %s274_s10 = sadd.s32 4294967295, %s398_s9   ;;  %s435_s11 = sadd.s32 1, %s398_s9   ;;  %s398_s9 = sphi %s421_s9, %s582_s9   ;;  %s394_s8 = sphi %s419_s8, %s581_s8   ;;  %s390_s7 = sphi %s417_s7, %s580_s7   ;;  %s386_s6 = sphi %s415_s6, %s579_s6  }
   0x4   : > { %s18_s12 = ssub.s32 %s398_s9, %s435_s11  ;;  %s21_s13 = sadd.s32 1, %s394_s8 }
   0x5   : > { %p19_p0 = scmp.eq.s32.totalorder %s18_s12, 0  ;;  %p28_p1 = scmp.ne.s32.totalorder %s394_s8, %s390_s7 }
   0x6   : > { %p29_p2 = scmp.eq.s32.totalorder %s398_s9, 0  ;;  %p34_p3 = scmp.ne.s32.totalorder %s390_s7, %s386_s6 }
   0x7   : > { %s445_s14 = scalar_select %p19_p0, %s394_s8, %s21_s13  }
   0x8   : > { %p30_p4 = por %p29_p2, %p28_p1  ;;  %p35_p5 = scmp.eq.s32.totalorder %s274_s10, 0 }
   0x9   : > { %p297_p6 = scmp.lt.s32.totalorder %s398_s9, 2  ;;  %s84_s16 = sand.u32 1, %s394_s8  }
   0xa   : > { %p450_p7 = por %p35_p5, %p34_p3  ;;  %s278_s17 = sshll.u32 %s84_s16, 6 }
   0xb   : > { %s289_s18 = sshll.u32 %s398_s9, 10  ;;  %s88_s22 = scalar_lea.vmem [#allocation2], %s278_s17 }
   0xc   : > { %s459_s21 = scalar_lea.hbm %s574_s0, %s289_s18  ;;  %s96_s23 = sshll.u32 %s88_s22, 4  ;;  %s461_s23 = int_to_ptr.vmem [resolvable:$true] %s96_s23 }
   0xd   : > { %p463_p8 = pnand %p297_p6, %p30_p4  ;;  %s468_s25 = scalar_lea.sflag [#allocation3], %s84_s16 }
   0xe   : > { %s334_s26 = scalar_lea.hbm %s459_s21, 1024  ;;  %s339_s29 = scalar_lea.hbm %s574_s0, 2048 }
   0xf   : > { %p335_p10 = scmp.ne.s32.totalorder %s459_s21, %s334_s26  ;;  %p336_p11 = pneg %p463_p8 }
  0x10   : > { %p340_p0 = scmp.lt.u32.totalorder %s459_s21, %s574_s0  ;;  %p341_p1 = scmp.lt.u32.totalorder %s339_s29, %s334_s26 }
  0x11   : > { %p337_p12 = pnand %p336_p11, %p335_p10  ;;  %p343_p3 = scmp.lt.u32.totalorder %s334_s26, %s459_s21 }
  0x12   : > { %p342_p2 = por %p341_p1, %p340_p0 }
  0x13   : > { %p338_p13 = pneg %p337_p12 }
  0x14   : > { %p344_p4 = por %p343_p3, %p342_p2 }
  0x16   : > { %p345_p5 = pnand %p344_p4, %p338_p13 }
  0x18   : > { %348 = shalt.err (!%p345_p5)
}
  0x19   : > { %s349_s3 = scalar_lea.vmem %s461_s23, 1024  ;;  %s400_s4 = smov [#allocation2]  }
  0x1a   : > { %p350_p6 = scmp.ne.s32.totalorder %s461_s23, %s349_s3  ;;  %s354_s5 = sshll.u32 %s400_s4, 4  ;;  %s355_s5 = int_to_ptr.vmem [resolvable:$false] %s354_s5 }
  0x1b   : > { %s356_s6 = scalar_lea.vmem %s355_s5, 2048  ;;  %p357_p9 = scmp.lt.s32.totalorder %s461_s23, %s355_s5 }
  0x1c   : > { %p352_p10 = pnand %p350_p6, %p336_p11  ;;  %p358_p0 = scmp.lt.s32.totalorder %s356_s6, %s349_s3 }
  0x1e   : > { %p353_p12 = pneg %p352_p10  ;;  %p359_p1 = por %p358_p0, %p357_p9 }
  0x20   : > { %p360_p2 = pnand %p359_p1, %p353_p12 }
  0x22   : > { %363 = shalt.err (!%p360_p2)
}
  0x23   : > { %s401_s12 = smov 128   ;;  %s402_s13 = smov 8  }
  0x24   : > { %296 = dma.hbm_to_vmem [thread:$0]  (!%p463_p8), %s459_s21, 1024, %s461_s23, %s468_s25, %s401_s12, %s401_s12, %s402_s13  }
  0x25   : > { %p104_p11 = scmp.lt.s32.totalorder %s398_s9, 3  ;;  %p578_p13 = scmp.ge.s32.totalorder %s398_s9, 1 }
  0x27   : > { %p105_p3 = pnand %p578_p13, %p104_p11 }
  0x28   : > { %s110_s16 = sand.u32 (!%p105_p3), 1, %s390_s7  }
  0x29   : > { %108 = sbr.rel (%p105_p3) target bundleno = 179 (0xb3), region = 24  ;;  %s283_s17 = sshll.u32 (!%p105_p3), %s110_s16, 6 }
  0x2a   : > { %s111_s18 = scalar_lea.sflag (!%p105_p3), [#allocation3], %s110_s16  ;;  %s500_s19 = scalar_lea.vmem (!%p105_p3), [#allocation2], %s283_s17 }
  0x30   : > { %381 = dma.done.wait (%p450_p7), %s111_s18, 1024  }
  0x31   : > { %383 = vsyncadd (%p450_p7), %s111_s18, 4294966272  ;;  %s284_s20 = sshll.u32 %s274_s10, 2  ;;  %vm142_vm0 = vcmask 171008   ;;  %vm145_vm1 = vcmask 167936   ;;  %v158_v0 = vld [vmem:[%s500_s19 + $0x10] sm:$0xff]  ;;  %v156_v1 = vld [vmem:[%s500_s19] sm:$0xff] }
  0x32   : > { %p136_p8 = scmp.lt.s32.totalorder %s284_s20, 7  ;;  %s403_s9 = smov 2   ;;  %v404_v2 = vmov 0.0   ;;  %v159_v3 = vld [vmem:[%s500_s19 + $0x18] sm:$0xff]  ;;  %v157_v4 = vld [vmem:[%s500_s19 + $0x8] sm:$0xff]  ;;  %v160_v6 = vld [vmem:[%s500_s19 + $0x20] sm:$0xff] }
  0x33   : > { %176 = vrot.lane.b32.xlu1 %v158_v0, %s403_s9  ;;  %172 = vrot.lane.b32.xlu0 %v156_v1, %s403_s9  ;;  %v161_v5 = vld [vmem:[%s500_s19 + $0x28] sm:$0xff]  ;;  %v163_v7 = vld [vmem:[%s500_s19 + $0x38] sm:$0xff]  ;;  %vm196_vm2 = vcmask 146448  }
  0x34   : > { %s584_s20 = smov (!%p136_p8, %s284_s20), 7  ;;  %v162_v8 = vld [vmem:[%s500_s19 + $0x30] sm:$0xff] }
  0x35   : > { %s290_s21 = smul.u32 24, %s584_s20 }
  0x37   : > { %s513_s24 = scalar_lea.vmem %s575_s1, %s290_s21  ;;  %178 = vrot.lane.b32.xlu1 %v159_v3, %s403_s9  ;;  %174 = vrot.lane.b32.xlu0 %v157_v4, %s403_s9 }
  0x38   : > { %144 = vst.msk [vmem:[%s513_s24 + $0x8] sm:$0xff] %vm142_vm0, %v404_v2  ;;  %143 = vst.msk [vmem:[%s513_s24] sm:$0xff] %vm142_vm0, %v404_v2 }
  0x39   : > { %146 = vst.msk [vmem:[%s513_s24 + $0x10] sm:$0x1f] %vm145_vm1, %v404_v2  ;;  %149 = vst.msk [vmem:[%s513_s24 + $0x28] sm:$0x1f] %vm145_vm1, %v404_v2 }
  0x3a   : > { %148 = vst.msk [vmem:[%s513_s24 + $0x20] sm:$0xff] %vm142_vm0, %v404_v2  ;;  %147 = vst.msk [vmem:[%s513_s24 + $0x18] sm:$0xff] %vm142_vm0, %v404_v2 }
  0x3b   : > { %151 = vst.msk [vmem:[%s513_s24 + $0x38] sm:$0xff] %vm142_vm0, %v404_v2  ;;  %150 = vst.msk [vmem:[%s513_s24 + $0x30] sm:$0xff] %vm142_vm0, %v404_v2  ;;  %182 = vrot.lane.b32.xlu1 %v161_v5, %s403_s9  ;;  %180 = vrot.lane.b32.xlu0 %v160_v6, %s403_s9 }
  0x3c   : > { %152 = vst.msk [vmem:[%s513_s24 + $0x40] sm:$0x1f] %vm145_vm1, %v404_v2  ;;  %155 = vst.msk [vmem:[%s513_s24 + $0x58] sm:$0x1f] %vm145_vm1, %v404_v2 }
  0x3d   : > { %154 = vst.msk [vmem:[%s513_s24 + $0x50] sm:$0xff] %vm142_vm0, %v404_v2  ;;  %153 = vst.msk [vmem:[%s513_s24 + $0x48] sm:$0xff] %vm142_vm0, %v404_v2 }
  0x3f   : > { %186 = vrot.lane.b32.xlu1 %v163_v7, %s403_s9  ;;  %184 = vrot.lane.b32.xlu0 %v162_v8, %s403_s9 }
  0xa5   : > { %v177_v9 = vpop.permute.xlu1 %176  ;;  %v173_v10 = vpop.permute.xlu0 %172 }
  0xa6   : > { %197 = vst.msk [vmem:[%s513_s24 + $0x2] sm:$0xff] %vm196_vm2, %v173_v10  ;;  %199 = vst.msk [vmem:[%s513_s24 + $0x1a] sm:$0xff] %vm196_vm2, %v177_v9 }
  0xa9   : > { %v179_v11 = vpop.permute.xlu1 %178  ;;  %v175_v12 = vpop.permute.xlu0 %174 }
  0xaa   : > { %198 = vst.msk [vmem:[%s513_s24 + $0xa] sm:$0xff] %vm196_vm2, %v175_v12  ;;  %200 = vst.msk [vmem:[%s513_s24 + $0x22] sm:$0xff] %vm196_vm2, %v179_v11 }
  0xad   : > { %v183_v13 = vpop.permute.xlu1 %182  ;;  %v181_v14 = vpop.permute.xlu0 %180 }
  0xae   : > { %202 = vst.msk [vmem:[%s513_s24 + $0x3a] sm:$0xff] %vm196_vm2, %v183_v13  ;;  %201 = vst.msk [vmem:[%s513_s24 + $0x32] sm:$0xff] %vm196_vm2, %v181_v14 }
  0xb1   : > { %v187_v15 = vpop.permute.xlu1 %186  ;;  %v185_v16 = vpop.permute.xlu0 %184 }
  0xb2   : > { %204 = vst.msk [vmem:[%s513_s24 + $0x52] sm:$0xff] %vm196_vm2, %v187_v15  ;;  %203 = vst.msk [vmem:[%s513_s24 + $0x4a] sm:$0xff] %vm196_vm2, %v185_v16 }
  0xb3 PF: > { %p11_p7 = scmp.ge.s32.totalorder %s435_s11, 4   ;;  %s579_s6 = smov %s390_s7 }
  0xb4   : > { %s580_s7 = smov %s394_s8  ;;  %s581_s8 = smov %s445_s14 }
  0xb5   : > { %s582_s9 = smov %s435_s11  ;;  %13 = sbr.rel (!%p11_p7) target bundleno = 3 (0x3), region = 64 }
  0xbc   :  { %229 = vsyncpa [#allocation3], 1 }
  0xbd   :  { %231 = vsyncpa [#allocation3 + $0x1], 1 }

</bundles_post_ra>
